<compile_context>
chip_gen: v7x
topology: tpu7x:2x2x1
jax: 0.10.0
libtpu: 0.0.40
codegen_flags: <defaults>
</compile_context>

<pallas_src>
import functools

import jax
import jax.numpy as jnp
from jax.experimental import pallas as pl
from jax.experimental.pallas import tpu as pltpu


def _layernorm_kernel(x_ref, w_ref, b_ref, o_ref, *, epsilon, d_model):
    # x_ref: (block_rows, d_model) tile in VMEM; reduction over the lane axis.
    x = x_ref[...].astype(jnp.float32)

    # Mean over the feature axis.
    mean = jnp.mean(x, axis=-1, keepdims=True)
    xc = x - mean

    # Unbiased std (Bessel's correction), matching torch.Tensor.std() default.
    var = jnp.sum(xc * xc, axis=-1, keepdims=True) * jnp.float32(1.0 / (d_model - 1))
    std = jnp.sqrt(var)

    # One (exact) reciprocal per row instead of d_model divides per row; the
    # broadcasted multiply below runs on the 4-wide VALU slots.
    inv = 1.0 / (std + jnp.float32(epsilon))

    # Scale & shift; w_ref/b_ref are (1, d_model), broadcast over rows.
    w = w_ref[...].astype(jnp.float32)
    b = b_ref[...].astype(jnp.float32)
    o_ref[...] = (xc * inv * w + b).astype(o_ref.dtype)


def _choose_block_rows(n_rows, d_model, itemsize,
                       vmem_budget_bytes=24 * 1024 * 1024,
                       max_block_rows=2048):
    """Largest row tile (multiple of 8) that keeps the pipeline in the VMEM budget.

    Budget accounting per tile row: 2x double-buffered input + 2x double-buffered
    output in the I/O dtype, plus ~3 float32 temporaries inside the kernel body.
    The 24 MiB budget (with a 32 MiB scoped limit) is sized for v7x's 64 MiB
    physical VMEM, which is the tightest of v5e/v6e/v7x.
    """
    bytes_per_row = d_model * (4 * itemsize + 3 * 4)
    rows = max(8, vmem_budget_bytes // bytes_per_row)
    rows = min(rows, max_block_rows)
    # No point making the block larger than the (8-rounded) total row count.
    rows = min(rows, ((n_rows + 7) // 8) * 8)
    # Sublane multiple of 8 (keep at least 8).
    rows = max(8, (rows // 8) * 8)
    return int(rows)


def layer_norm_pallas(x, w_ln, b_ln, epsilon=0.0001, use_ln=True, block_rows=None):
    """x: (..., d_model). Returns LayerNorm(x) with PyTorch-reference semantics."""
    if not use_ln:
        return x

    d_model = x.shape[-1]
    if d_model < 2:
        raise ValueError("d_model must be > 1 for the unbiased std (ddof=1).")

    orig_shape = x.shape
    x2d = x.reshape(-1, d_model)          # free reshape (contiguous), no HBM copy
    n_rows = x2d.shape[0]

    itemsize = jnp.dtype(x.dtype).itemsize
    if block_rows is None:
        block_rows = _choose_block_rows(n_rows, d_model, itemsize)

    # Ragged last block: Pallas pads out-of-bounds reads and drops out-of-bounds
    # writes, so no host-side jnp.pad / slice round trip is needed.
    grid = (pl.cdiv(n_rows, block_rows),)

    w2d = w_ln.reshape(1, d_model)
    b2d = b_ln.reshape(1, d_model)

    # Advisory cost for XLA scheduling: this kernel is HBM-bandwidth bound.
    cost = pl.CostEstimate(
        flops=8 * n_rows * d_model,
        transcendentals=2 * n_rows,  # sqrt + reciprocal per row
        bytes_accessed=2 * n_rows * d_model * itemsize + 2 * d_model * itemsize,
    )

    kernel = functools.partial(_layernorm_kernel, epsilon=epsilon, d_model=d_model)

    # TODO(synk): for d_model that is not a multiple of 128 (e.g. the demo's 32),
    # a lane-packing repack (folding several rows into a 128-dense lane axis)
    # would avoid masked vst.msk stores; skipped here to keep the kernel general
    # and robust. For the common case (d_model a multiple of 128) the output is
    # already lane-dense.
    out = pl.pallas_call(
        kernel,
        out_shape=jax.ShapeDtypeStruct((n_rows, d_model), x.dtype),
        grid_spec=pltpu.PrefetchScalarGridSpec(
            num_scalar_prefetch=0,
            grid=grid,
            in_specs=[
                pl.BlockSpec((block_rows, d_model), lambda i: (i, 0)),
                pl.BlockSpec((1, d_model), lambda i: (0, 0)),
                pl.BlockSpec((1, d_model), lambda i: (0, 0)),
            ],
            out_specs=pl.BlockSpec((block_rows, d_model), lambda i: (i, 0)),
        ),
        compiler_params=pltpu.CompilerParams(
            dimension_semantics=("parallel",),
            vmem_limit_bytes=32 * 1024 * 1024,
        ),
        cost_estimate=cost,
    )(x2d, w2d, b2d)

    return out.reshape(orig_shape)


def layer_norm_ref(x, w_ln, b_ln, epsilon=0.0001):
    # Pure-JAX reference mirroring the PyTorch forward (unbiased std).
    mean = jnp.mean(x, axis=-1, keepdims=True)
    xc = x - mean
    var = jnp.sum(xc * xc, axis=-1, keepdims=True) / (x.shape[-1] - 1)
    std = jnp.sqrt(var)
    return xc / (std + epsilon) * w_ln + b_ln


if __name__ == "__main__":
    key = jax.random.PRNGKey(0)
    epsilon = 0.0001

    # Primary shapes implied by the module: (batch, seq, d_model).
    batch, seq, d_model = 2, 8, 32
    x = jax.random.normal(key, (batch, seq, d_model), dtype=jnp.float32)

    # Deterministic parameter init matching nn.Parameter(t.ones/t.zeros(d_model)).
    w_ln = jnp.ones((d_model,), dtype=jnp.float32)
    b_ln = jnp.zeros((d_model,), dtype=jnp.float32)

    y = layer_norm_pallas(x, w_ln, b_ln, epsilon=epsilon, use_ln=True)
    y = jax.block_until_ready(y)
    y_ref = layer_norm_ref(x, w_ln, b_ln, epsilon=epsilon)
    assert jnp.allclose(y, y_ref, atol=1e-5, rtol=1e-5), "mismatch vs reference"

    # Exercise the ragged (no-pad) path: 15 rows with a forced 8-row block ->
    # 2 grid steps, last block partially out of bounds.
    x2 = jax.random.normal(jax.random.PRNGKey(1), (3, 5, d_model), dtype=jnp.float32)
    y2 = layer_norm_pallas(x2, w_ln, b_ln, epsilon=epsilon, use_ln=True, block_rows=8)
    y2 = jax.block_until_ready(y2)
    y2_ref = layer_norm_ref(x2, w_ln, b_ln, epsilon=epsilon)
    assert jnp.allclose(y2, y2_ref, atol=1e-5, rtol=1e-5), "mismatch (ragged path)"

    # use_ln=False pass-through path.
    assert layer_norm_pallas(x, w_ln, b_ln, epsilon=epsilon, use_ln=False) is x

    print("KERNEL_OK")
</pallas_src>

<mosaic_0001>
module attributes {stable_mosaic.version = 11 : i64} {
  func.func @_layernorm_kernel(%arg0: i32, %arg1: memref<16x32xf32, #tpu.memory_space<vmem>>, %arg2: memref<1x32xf32, #tpu.memory_space<vmem>>, %arg3: memref<1x32xf32, #tpu.memory_space<vmem>>, %arg4: memref<16x32xf32, #tpu.memory_space<vmem>>) attributes {dimension_semantics = [#tpu.dimension_semantics<parallel>], iteration_bounds = array<i64: 1>, scalar_prefetch = 0 : i64, scratch_operands = 0 : i64, tpu.core_type = #tpu.core_type<tc>, window_params = [{transform_indices = @transform_0, window_bounds = array<i64: 16, 32>}, {pipeline_mode = #tpu.pipeline_mode<synchronous>, transform_indices = @transform_1, window_bounds = array<i64: 1, 32>}, {pipeline_mode = #tpu.pipeline_mode<synchronous>, transform_indices = @transform_2, window_bounds = array<i64: 1, 32>}, {transform_indices = @transform_3, window_bounds = array<i64: 16, 32>}]} {
    %c0 = arith.constant 0 : index
    %c0_0 = arith.constant 0 : index
    %0 = vector.load %arg1[%c0, %c0_0] : memref<16x32xf32, #tpu.memory_space<vmem>>, vector<16x32xf32>
    %cst = arith.constant dense<0.000000e+00> : vector<16xf32>
    %1 = vector.multi_reduction <add>, %0, %cst [1] : vector<16x32xf32> to vector<16xf32>
    %2 = vector.shape_cast %1 : vector<16xf32> to vector<16x1xf32>
    %cst_1 = arith.constant 3.200000e+01 : f32
    %3 = vector.broadcast %cst_1 : f32 to vector<16x1xf32>
    %4 = arith.divf %2, %3 : vector<16x1xf32>
    %5 = vector.broadcast %4 : vector<16x1xf32> to vector<16x32xf32>
    %6 = arith.subf %0, %5 : vector<16x32xf32>
    %7 = arith.mulf %6, %6 : vector<16x32xf32>
    %cst_2 = arith.constant dense<0.000000e+00> : vector<16xf32>
    %8 = vector.multi_reduction <add>, %7, %cst_2 [1] : vector<16x32xf32> to vector<16xf32>
    %9 = vector.shape_cast %8 : vector<16xf32> to vector<16x1xf32>
    %cst_3 = arith.constant 0.0322580636 : f32
    %10 = vector.broadcast %cst_3 : f32 to vector<16x1xf32>
    %11 = arith.mulf %9, %10 : vector<16x1xf32>
    %12 = math.sqrt %11 : vector<16x1xf32>
    %cst_4 = arith.constant 9.99999974E-5 : f32
    %13 = vector.broadcast %cst_4 : f32 to vector<16x1xf32>
    %14 = arith.addf %12, %13 : vector<16x1xf32>
    %cst_5 = arith.constant 1.000000e+00 : f32
    %15 = vector.broadcast %cst_5 : f32 to vector<16x1xf32>
    %16 = arith.divf %15, %14 : vector<16x1xf32>
    %c0_6 = arith.constant 0 : index
    %c0_7 = arith.constant 0 : index
    %17 = vector.load %arg2[%c0_6, %c0_7] : memref<1x32xf32, #tpu.memory_space<vmem>>, vector<1x32xf32>
    %c0_8 = arith.constant 0 : index
    %c0_9 = arith.constant 0 : index
    %18 = vector.load %arg3[%c0_8, %c0_9] : memref<1x32xf32, #tpu.memory_space<vmem>>, vector<1x32xf32>
    %19 = vector.broadcast %16 : vector<16x1xf32> to vector<16x32xf32>
    %20 = arith.mulf %6, %19 : vector<16x32xf32>
    %21 = vector.broadcast %17 : vector<1x32xf32> to vector<16x32xf32>
    %22 = arith.mulf %20, %21 : vector<16x32xf32>
    %23 = vector.broadcast %18 : vector<1x32xf32> to vector<16x32xf32>
    %24 = arith.addf %22, %23 : vector<16x32xf32>
    %c0_10 = arith.constant 0 : index
    %c0_11 = arith.constant 0 : index
    %25 = vector.load %arg4[%c0_10, %c0_11] : memref<16x32xf32, #tpu.memory_space<vmem>>, vector<16x32xf32>
    tpu.vector_store %arg4[%c0_10, %c0_11], %24 {strides = array<i32>} : memref<16x32xf32, #tpu.memory_space<vmem>>, vector<16x32xf32>,
    return
  }
  func.func @transform_0(%arg0: i32) -> (i32, i32) {
    %c0_i32 = arith.constant 0 : i32
    %c0_i32_0 = arith.constant 0 : i32
    return %arg0, %c0_i32 : i32, i32
  }
  func.func @transform_1(%arg0: i32) -> (i32, i32) {
    %c0_i32 = arith.constant 0 : i32
    %c0_i32_0 = arith.constant 0 : i32
    %c0_i32_1 = arith.constant 0 : i32
    return %c0_i32, %c0_i32_0 : i32, i32
  }
  func.func @transform_2(%arg0: i32) -> (i32, i32) {
    %c0_i32 = arith.constant 0 : i32
    %c0_i32_0 = arith.constant 0 : i32
    %c0_i32_1 = arith.constant 0 : i32
    return %c0_i32, %c0_i32_0 : i32, i32
  }
  func.func @transform_3(%arg0: i32) -> (i32, i32) {
    %c0_i32 = arith.constant 0 : i32
    %c0_i32_0 = arith.constant 0 : i32
    return %arg0, %c0_i32 : i32, i32
  }
}

</mosaic_0001>

<bundles_post_ra>
// kernel: tpu_custom_call.1
= control target key start
LH: loop header
LB: loop body
LE: loop exit
PB: predicated region body
PF: predicated region fallthrough
CT: control target
= control target key end

     0   :  { %8 = vsyncpa [#allocation3], 0  ;;  %s240_s0 = inlined_call_operand.hbm [shape: f32[16,32], index: 0, kind: input, shape index: {}]   ;;  %s241_s1 = inlined_call_operand.vmem [shape: f32[1,32], index: 1, kind: input, shape index: {}]   ;;  %s242_s2 = inlined_call_operand.vmem [shape: f32[1,32], index: 2, kind: input, shape index: {}]   ;;  %s243_s3 = inlined_call_operand.hbm [shape: f32[16,32], index: 3, kind: output, shape index: {}]  }
   0x1   :  { %9 = vsyncpa [#allocation4], 0  ;;  %s174_s12 = smov [#allocation2]   ;;  %s126_s16 = scalar_lea.hbm %s240_s0, 256 }
   0x2   :  { %s15_s13 = sshll.u32 %s174_s12, 4  ;;  %p127_p0 = scmp.ne.s32.totalorder %s240_s0, %s126_s16  ;;  %s16_s13 = int_to_ptr.vmem [resolvable:$true] %s15_s13 }
   0x3   :  { %p130_p1 = scmp.lt.u32.totalorder %s126_s16, %s240_s0 }
   0x5   :  { %p132_p2 = pnand %p130_p1, %p127_p0 }
   0x7   :  { %135 = shalt.err (!%p132_p2)
}
   0x8   :  { %s136_s21 = scalar_lea.vmem %s16_s13, 256  ;;  %p141_p4 = scmp.lt.s32.totalorder %s16_s13, %s16_s13 }
   0x9   :  { %p137_p3 = scmp.ne.s32.totalorder %s16_s13, %s136_s21  ;;  %p142_p5 = scmp.lt.s32.totalorder %s136_s21, %s136_s21 }
   0xb   :  { %p143_p6 = por %p142_p5, %p141_p4 }
   0xd   :  { %p144_p7 = pnand %p143_p6, %p137_p3 }
   0xf   :  { %147 = shalt.err (!%p144_p7)
}
  0x10   :  { %s175_s22 = smov 128   ;;  %s176_s23 = smov 8  }
  0x11   :  { %21 = dma.hbm_to_vmem [thread:$0]  %s240_s0, 256, %s16_s13, [#allocation3], %s175_s22, %s175_s22, %s176_s23  }
  0x12   :  { %170 = dma.done.wait [#allocation3], 256  }
  0x13   :  { %171 = vsyncadd [#allocation3], 4294967040  ;;  %vm31_vm0 = vcmask 261120   ;;  %v29_v0 = vld [vmem:[#allocation2] sm:$0xff]  ;;  %v30_v1 = vld [vmem:[#allocation2 + $0x8] sm:$0xff]  ;;  %s177_s29 = smov [#allocation5]  }
  0x14   :  { %v32_v2 = vsel %vm31_vm0, %v29_v0, 0.0  ;;  %v35_v3 = vsel %vm31_vm0, %v30_v1, 0.0  ;;  %v112_v31 = vld [vmem:[%s241_s1] ss:$0 sm:$0xff]  ;;  %s100_s30 = sshll.u32 %s177_s29, 4  ;;  %s101_s30 = int_to_ptr.vmem [resolvable:$true] %s100_s30 }
  0x15   :  { %33 = vadd.xlane.f32.xlu0 %v32_v2  ;;  %v113_v33 = vld [vmem:[%s242_s2] ss:$0 sm:$0xff]  ;;  %s148_s4 = scalar_lea.vmem %s101_s30, 256  ;;  %p153_p9 = scmp.lt.s32.totalorder %s101_s30, %s101_s30 }
  0x16   :  { %p149_p8 = scmp.ne.s32.totalorder %s101_s30, %s148_s4  ;;  %p154_p10 = scmp.lt.s32.totalorder %s148_s4, %s148_s4 }
  0x18   :  { %p155_p11 = por %p154_p10, %p153_p9 }
  0x19   :  { %36 = vadd.xlane.f32.xlu0 %v35_v3 }
  0x1a   :  { %p156_p12 = pnand %p155_p11, %p149_p8 }
  0xa2   :  { %v34_v4 = vpop.xlane.xlu0 %33 }
  0xa3   :  { %v39_v5 = vmul.f32 0.03125, %v34_v4 }
  0xa5   :  { %v41_v6 = vsub.f32 %v29_v0, %v39_v5 }
  0xa6   :  { %v37_v7 = vpop.xlane.xlu0 %36 }
  0xa7   :  { %v40_v8 = vmul.f32 0.03125, %v37_v7  ;;  %v43_v9 = vmul.f32 %v41_v6, %v41_v6 }
  0xa9   :  { %v42_v10 = vsub.f32 %v30_v1, %v40_v8  ;;  %v45_v11 = vsel %vm31_vm0, %v43_v9, 0.0 }
  0xaa   :  { %46 = vadd.xlane.f32.xlu1 %v45_v11 }
  0xab   :  { %v44_v12 = vmul.f32 %v42_v10, %v42_v10 }
  0xad   :  { %v48_v13 = vsel %vm31_vm0, %v44_v12, 0.0 }
  0xae   :  { %49 = vadd.xlane.f32.xlu1 %v48_v13 }
 0x137   :  { %v47_v14 = vpop.xlane.xlu1 %46 }
 0x138   :  { %v51_v15 = vmul.f32 0.032258064, %v47_v14 }
 0x13a   :  { %118 = vrsqrt.f32 %v51_v15  ;;  %vm55_vm1 = vcmp.eq.f32.partialorder %v51_v15, inf  ;;  %v58_v20 = vand.u32 2147483648, %v51_v15  ;;  %vm57_vm2 = vcmp.eq.f32.partialorder %v51_v15, 0.0 }
 0x13b   :  { %v50_v16 = vpop.xlane.xlu1 %49 }
 0x13c   :  { %v52_v17 = vmul.f32 0.032258064, %v50_v16 }
 0x13e   :  { %120 = vrsqrt.f32 %v52_v17  ;;  %vm62_vm3 = vcmp.eq.f32.partialorder %v52_v17, inf  ;;  %v65_v26 = vand.u32 2147483648, %v52_v17  ;;  %vm64_vm4 = vcmp.eq.f32.partialorder %v52_v17, 0.0 }
 0x144   :  { %v119_v18 = vpop.eup %118 }
 0x145   :  { %v54_v19 = vmul.f32 %v119_v18, %v51_v15 }
 0x147   :  { %v56_v21 = vsel %vm55_vm1, %v51_v15, %v54_v19 }
 0x148   :  { %v121_v22 = vpop.eup %120  ;;  %v59_v23 = vsel %vm57_vm2, %v58_v20, %v56_v21 }
 0x149   :  { %v67_v24 = vadd.f32 0.0001, %v59_v23  ;;  %v61_v25 = vmul.f32 %v121_v22, %v52_v17 }
 0x14b   :  { %122 = vrcp.f32 %v67_v24  ;;  %v63_v27 = vsel %vm62_vm3, %v52_v17, %v61_v25 }
 0x14c   :  { %v66_v28 = vsel %vm64_vm4, %v65_v26, %v63_v27 }
 0x14d   :  { %v68_v29 = vadd.f32 0.0001, %v66_v28 }
 0x14f   :  { %124 = vrcp.f32 %v68_v29 }
 0x155   :  { %v123_v30 = vpop.eup %122 }
 0x156   :  { %v75_v32 = vmul.f32 %v123_v30, %v41_v6 }
 0x158   :  { %v83_v34 = vmul.f32 %v112_v31, %v75_v32 }
 0x159   :  { %v125_v35 = vpop.eup %124 }
 0x15a   :  { %v76_v36 = vmul.f32 %v125_v35, %v42_v10  ;;  %v91_v37 = vadd.f32 %v113_v33, %v83_v34 }
 0x15c   :  { %v84_v38 = vmul.f32 %v112_v31, %v76_v36  ;;  %93 = vst.msk [vmem:[#allocation5] sm:$0xff] %vm31_vm0, %v91_v37 }
 0x15e   :  { %v92_v39 = vadd.f32 %v113_v33, %v84_v38 }
 0x160   :  { %94 = vst.msk [vmem:[#allocation5 + $0x8] sm:$0xff] %vm31_vm0, %v92_v39 }
 0x161   :  { %159 = shalt.err (!%p156_p12)
}
 0x162   :  { %s160_s5 = scalar_lea.hbm %s243_s3, 256 }
 0x163   :  { %p161_p13 = scmp.ne.s32.totalorder %s243_s3, %s160_s5  ;;  %p164_p0 = scmp.lt.u32.totalorder %s160_s5, %s243_s3 }
 0x165   :  { %p166_p1 = pnand %p164_p0, %p161_p13 }
 0x167   :  { %169 = shalt.err (!%p166_p1)
}
 0x168   :  { %106 = dma.vmem_to_hbm [thread:$0]  %s101_s30, 256, %s243_s3, [#allocation4], %s175_s22, %s175_s22, %s176_s23  }
 0x169   :  { %172 = dma.done.wait [#allocation4], 256  }
 0x16a   :  { %173 = vsyncadd [#allocation4], 4294967040 }
 0x16b   :  { %110 = vsyncpa [#allocation3], 1 }
 0x16c   :  { %111 = vsyncpa [#allocation4], 1 }

</bundles_post_ra>
